<compile_context>
chip_gen: v6e
topology: v6e:2x2x1
jax: 0.10.0
libtpu: 0.0.40
codegen_flags: <defaults>
</compile_context>

<pallas_src>
import jax
import jax.numpy as jnp
from jax.experimental import pallas as pl
from jax.experimental.pallas import tpu as pltpu


def _embedder_time_kernel(ids_ref, times_ref, table_t_ref, w_ref, b_ref, out_ref):
    # ids_ref:     [1, TILE_N] int32     flattened activity ids (lane-dense)
    # times_ref:   [1, TILE_N] float32   flattened event times  (lane-dense)
    # table_t_ref: [H, A]      float32   embedding table, pre-transposed
    # w_ref/b_ref: [K1, 1]     float32   Time2Vec weights / biases (K1 = k+1)
    # out_ref:     [TILE_N, K1 + H]      row-major output block
    ids = ids_ref[...]                                   # [1, TN]
    t = times_ref[...]                                   # [1, TN]
    tn = ids.shape[1]
    h, a = table_t_ref.shape
    k1 = w_ref.shape[0]

    # One-hot (transposed): onehot_t[a, n] = (ids[n] == a); then a plain MXU
    # matmul [H, A] x [A, TN] -> [H, TN]. Gather-free and exact.
    onehot_t = (jax.lax.broadcasted_iota(jnp.int32, (a, tn), 0) == ids).astype(jnp.float32)
    emb_t = jnp.dot(table_t_ref[...], onehot_t,
                    preferred_element_type=jnp.float32)               # [H, TN]

    # Time2Vec, feature-major: proj_t[f, n] = w[f] * t[n] + b[f].
    proj_t = t * w_ref[...] + b_ref[...]                              # [K1, TN]
    row = jax.lax.broadcasted_iota(jnp.int32, (k1, tn), 0)
    time_t = jnp.where(row == 0, proj_t, jnp.sin(proj_t))             # linear row 0, sin rows 1..k

    # Build the full [F, TN] tile in registers, transpose once on the XLU,
    # single full-ref (unmasked-on-HBM, contiguous) store into [TN, F].
    full_t = jnp.concatenate([time_t, emb_t], axis=0)                 # [F, TN]
    out_ref[...] = full_t.T.astype(out_ref.dtype)                     # [TN, F]


def _embedder_kernel(ids_ref, table_t_ref, out_ref):
    # Embedding-only path (event_times is None). out_ref: [TILE_N, H].
    ids = ids_ref[...]                                   # [1, TN]
    tn = ids.shape[1]
    a = table_t_ref.shape[1]
    onehot_t = (jax.lax.broadcasted_iota(jnp.int32, (a, tn), 0) == ids).astype(jnp.float32)
    emb_t = jnp.dot(table_t_ref[...], onehot_t,
                    preferred_element_type=jnp.float32)               # [H, TN]
    out_ref[...] = emb_t.T.astype(out_ref.dtype)                      # [TN, H]


def _pick_tile_n(tile_n: int, n_rows: int, num_activities: int) -> int:
    """Clamp/validate the row tile: lane-dense, VMEM-safe, not absurdly padded."""
    assert tile_n % 128 == 0, "tile_n must be a multiple of 128 (lane width)"
    # Don't pad tiny problems up to a giant tile.
    n_rounded = -(-n_rows // 128) * 128
    tile_n = min(tile_n, n_rounded)
    # Keep the one-hot transient (A * TILE_N * 4 B) comfortably inside scoped
    # VMEM even for larger vocabularies (esp. v7x's smaller VMEM).
    while num_activities * tile_n * 4 > (8 << 20) and tile_n > 512:
        tile_n //= 2
    tile_n = max(128, (tile_n // 128) * 128)
    return tile_n


def base_embedder_forward(event_activities, embedding_table,
                          event_times=None, t2v_w=None, t2v_b=None,
                          tile_n: int = 8192, out_dtype=jnp.float32):
    """event_activities: [max_len, batch] int; event_times: [max_len, batch] float."""
    L, B = event_activities.shape
    A, H = embedding_table.shape
    N = L * B

    tile_n = _pick_tile_n(tile_n, N, A)

    # Pad rows to a multiple of TILE_N so every grid step is a full, lane-dense
    # (128-multiple) block; padded rows are sliced off afterwards (no-op when
    # N is already a multiple of TILE_N).
    n_pad = pl.cdiv(N, tile_n) * tile_n
    ids = event_activities.reshape(1, N).astype(jnp.int32)
    if n_pad != N:
        ids = jnp.pad(ids, ((0, 0), (0, n_pad - N)))
    table_t = embedding_table.astype(jnp.float32).T                   # [H, A]

    grid = (n_pad // tile_n,)
    row_spec = pl.BlockSpec((1, tile_n), lambda i: (0, i))
    tab_spec = pl.BlockSpec((H, A), lambda i: (0, 0))                  # resident
    cparams = pltpu.CompilerParams(dimension_semantics=("parallel",))

    if event_times is None:
        cost = pl.CostEstimate(
            flops=2 * H * A * n_pad,
            transcendentals=0,
            bytes_accessed=n_pad * 4 + n_pad * H * jnp.dtype(out_dtype).itemsize
            + H * A * 4,
        )
        out = pl.pallas_call(
            _embedder_kernel,
            out_shape=jax.ShapeDtypeStruct((n_pad, H), out_dtype),
            grid=grid,
            in_specs=[row_spec, tab_spec],
            out_specs=pl.BlockSpec((tile_n, H), lambda i: (i, 0)),
            compiler_params=cparams,
            cost_estimate=cost,
        )(ids, table_t)
        return out[:N].reshape(L, B, H)

    K1 = t2v_w.shape[0]
    F = K1 + H
    times = event_times.reshape(1, N).astype(jnp.float32)
    if n_pad != N:
        times = jnp.pad(times, ((0, 0), (0, n_pad - N)))
    w = t2v_w.reshape(K1, 1).astype(jnp.float32)
    b = t2v_b.reshape(K1, 1).astype(jnp.float32)

    cost = pl.CostEstimate(
        flops=2 * H * A * n_pad + 4 * K1 * n_pad,
        transcendentals=K1 * n_pad,
        bytes_accessed=2 * n_pad * 4 + n_pad * F * jnp.dtype(out_dtype).itemsize
        + H * A * 4 + 2 * K1 * 4,
    )
    out = pl.pallas_call(
        _embedder_time_kernel,
        out_shape=jax.ShapeDtypeStruct((n_pad, F), out_dtype),
        grid=grid,
        in_specs=[row_spec, row_spec, tab_spec,
                  pl.BlockSpec((K1, 1), lambda i: (0, 0)),
                  pl.BlockSpec((K1, 1), lambda i: (0, 0))],
        out_specs=pl.BlockSpec((tile_n, F), lambda i: (i, 0)),
        compiler_params=cparams,
        cost_estimate=cost,
    )(ids, times, table_t, w, b)
    return out[:N].reshape(L, B, F)


if __name__ == "__main__":
    # Small, deterministic setup consistent with BaseEmbedder.__init__.
    num_activities = 16
    hidden_size = 32
    time2vec_k = 7            # -> k+1 = 8 time features
    max_len, batch = 8, 2

    key = jax.random.PRNGKey(0)
    k_tab, k_w, k_b, k_ids, k_t = jax.random.split(key, 5)

    embedding_table = jax.random.normal(k_tab, (num_activities, hidden_size), jnp.float32)
    t2v_w = jax.random.normal(k_w, (time2vec_k + 1,), jnp.float32)
    t2v_b = jax.random.normal(k_b, (time2vec_k + 1,), jnp.float32)

    event_activities = jax.random.randint(k_ids, (max_len, batch), 0, num_activities, jnp.int32)
    event_times = jax.random.uniform(k_t, (max_len, batch), jnp.float32)

    out = base_embedder_forward(event_activities, embedding_table,
                                event_times, t2v_w, t2v_b)
    out = jax.block_until_ready(out)

    # Pure-JAX reference check of the same semantics.
    ref_emb = embedding_table[event_activities]                                  # [L, B, H]
    proj = event_times[..., None] * t2v_w + t2v_b                                # [L, B, k+1]
    ref_t2v = jnp.concatenate([proj[..., :1], jnp.sin(proj[..., 1:])], axis=-1)
    ref = jnp.concatenate([ref_t2v, ref_emb], axis=-1)
    assert out.shape == (max_len, batch, time2vec_k + 1 + hidden_size), out.shape
    assert jnp.allclose(out, ref, atol=1e-5), "mismatch vs reference"

    # Also exercise the event_times=None path (returns just the embeddings).
    out2 = jax.block_until_ready(base_embedder_forward(event_activities, embedding_table))
    assert out2.shape == (max_len, batch, hidden_size)
    assert jnp.allclose(out2, ref_emb, atol=1e-5)

    # TODO(synk): GRU (and its dropout) defined in __init__ is unreachable in forward (early return), so it is not implemented.
    print("KERNEL_OK")
</pallas_src>

<mosaic_0001>
module attributes {stable_mosaic.version = 11 : i64} {
  func.func @_embedder_time_kernel(%arg0: i32, %arg1: memref<1x128xi32, #tpu.memory_space<vmem>>, %arg2: memref<1x128xf32, #tpu.memory_space<vmem>>, %arg3: memref<32x16xf32, #tpu.memory_space<vmem>>, %arg4: memref<8x1xf32, #tpu.memory_space<vmem>>, %arg5: memref<8x1xf32, #tpu.memory_space<vmem>>, %arg6: memref<128x40xf32, #tpu.memory_space<vmem>>) attributes {dimension_semantics = [#tpu.dimension_semantics<parallel>], iteration_bounds = array<i64: 1>, scalar_prefetch = 0 : i64, scratch_operands = 0 : i64, tpu.core_type = #tpu.core_type<tc>, window_params = [{transform_indices = @transform_0, window_bounds = array<i64: 1, 128>}, {transform_indices = @transform_1, window_bounds = array<i64: 1, 128>}, {pipeline_mode = #tpu.pipeline_mode<synchronous>, transform_indices = @transform_2, window_bounds = array<i64: 32, 16>}, {pipeline_mode = #tpu.pipeline_mode<synchronous>, transform_indices = @transform_3, window_bounds = array<i64: 8, 1>}, {pipeline_mode = #tpu.pipeline_mode<synchronous>, transform_indices = @transform_4, window_bounds = array<i64: 8, 1>}, {transform_indices = @transform_5, window_bounds = array<i64: 128, 40>}]} {
    %c0 = arith.constant 0 : index
    %c0_0 = arith.constant 0 : index
    %0 = vector.load %arg1[%c0, %c0_0] : memref<1x128xi32, #tpu.memory_space<vmem>>, vector<1x128xi32>
    %c0_1 = arith.constant 0 : index
    %c0_2 = arith.constant 0 : index
    %1 = vector.load %arg2[%c0_1, %c0_2] : memref<1x128xf32, #tpu.memory_space<vmem>>, vector<1x128xf32>
    %2 = tpu.iota {dimensions = array<i32: 0>} : vector<16x128xi32>
    %3 = vector.broadcast %0 : vector<1x128xi32> to vector<16x128xi32>
    %4 = arith.cmpi eq, %2, %3 : vector<16x128xi32>
    %5 = arith.extui %4 : vector<16x128xi1> to vector<16x128xi32>
    %6 = arith.sitofp %5 : vector<16x128xi32> to vector<16x128xf32>
    %c0_3 = arith.constant 0 : index
    %c0_4 = arith.constant 0 : index
    %7 = vector.load %arg3[%c0_3, %c0_4] : memref<32x16xf32, #tpu.memory_space<vmem>>, vector<32x16xf32>
    %cst = arith.constant dense<0.000000e+00> : vector<32x128xf32>
    %8 = tpu.matmul %7, %6, %cst {dimension_numbers = #tpu.dot_dimension_numbers<[1], [0], [0], [1], [0, 0, 1, 1], [], []>} : vector<32x16xf32>, vector<16x128xf32>, vector<32x128xf32> -> vector<32x128xf32>
    %c0_5 = arith.constant 0 : index
    %c0_6 = arith.constant 0 : index
    %9 = vector.load %arg4[%c0_5, %c0_6] : memref<8x1xf32, #tpu.memory_space<vmem>>, vector<8x1xf32>
    %10 = vector.broadcast %1 : vector<1x128xf32> to vector<8x128xf32>
    %11 = vector.broadcast %9 : vector<8x1xf32> to vector<8x128xf32>
    %12 = arith.mulf %10, %11 : vector<8x128xf32>
    %c0_7 = arith.constant 0 : index
    %c0_8 = arith.constant 0 : index
    %13 = vector.load %arg5[%c0_7, %c0_8] : memref<8x1xf32, #tpu.memory_space<vmem>>, vector<8x1xf32>
    %14 = vector.broadcast %13 : vector<8x1xf32> to vector<8x128xf32>
    %15 = arith.addf %12, %14 : vector<8x128xf32>
    %16 = tpu.iota {dimensions = array<i32: 0>} : vector<8x128xi32>
    %c0_i32 = arith.constant 0 : i32
    %17 = vector.broadcast %c0_i32 : i32 to vector<8x128xi32>
    %18 = arith.cmpi eq, %16, %17 : vector<8x128xi32>
    %19 = math.sin %15 : vector<8x128xf32>
    %20 = arith.select %18, %15, %19 : vector<8x128xi1>, vector<8x128xf32>
    %21 = tpu.concatenate %20, %8 in 0 : vector<8x128xf32>, vector<32x128xf32> -> vector<40x128xf32>
    %22 = tpu.transpose %21, [1, 0] : vector<40x128xf32> -> vector<128x40xf32>
    %c0_9 = arith.constant 0 : index
    %c0_10 = arith.constant 0 : index
    %23 = vector.load %arg6[%c0_9, %c0_10] : memref<128x40xf32, #tpu.memory_space<vmem>>, vector<128x40xf32>
    tpu.vector_store %arg6[%c0_9, %c0_10], %22 {strides = array<i32>} : memref<128x40xf32, #tpu.memory_space<vmem>>, vector<128x40xf32>,
    return
  }
  func.func @transform_0(%arg0: i32) -> (i32, i32) {
    %c0_i32 = arith.constant 0 : i32
    %c0_i32_0 = arith.constant 0 : i32
    return %c0_i32, %arg0 : i32, i32
  }
  func.func @transform_1(%arg0: i32) -> (i32, i32) {
    %c0_i32 = arith.constant 0 : i32
    %c0_i32_0 = arith.constant 0 : i32
    return %c0_i32, %arg0 : i32, i32
  }
  func.func @transform_2(%arg0: i32) -> (i32, i32) {
    %c0_i32 = arith.constant 0 : i32
    %c0_i32_0 = arith.constant 0 : i32
    %c0_i32_1 = arith.constant 0 : i32
    return %c0_i32, %c0_i32_0 : i32, i32
  }
  func.func @transform_3(%arg0: i32) -> (i32, i32) {
    %c0_i32 = arith.constant 0 : i32
    %c0_i32_0 = arith.constant 0 : i32
    %c0_i32_1 = arith.constant 0 : i32
    return %c0_i32, %c0_i32_0 : i32, i32
  }
  func.func @transform_4(%arg0: i32) -> (i32, i32) {
    %c0_i32 = arith.constant 0 : i32
    %c0_i32_0 = arith.constant 0 : i32
    %c0_i32_1 = arith.constant 0 : i32
    return %c0_i32, %c0_i32_0 : i32, i32
  }
  func.func @transform_5(%arg0: i32) -> (i32, i32) {
    %c0_i32 = arith.constant 0 : i32
    %c0_i32_0 = arith.constant 0 : i32
    return %arg0, %c0_i32 : i32, i32
  }
}

</mosaic_0001>

<bundles_post_ra>
// kernel: tpu_custom_call.1
= control target key start
LH: loop header
LB: loop body
LE: loop exit
PB: predicated region body
PF: predicated region fallthrough
CT: control target
= control target key end

     0   :  { %v22_v0 = vlaneseq  ;;  %vm39_vm0 = vcmask 130048   ;;  %v368_v1 = vmov 0   ;;  %v369_v9 = vmov 1.0   ;;  %s525_s3 = inlined_call_operand.vmem [shape: f32[8,1], index: 3, kind: input, shape index: {}]   ;;  %s526_s4 = inlined_call_operand.vmem [shape: f32[8,1], index: 4, kind: input, shape index: {}]   ;;  %s527_s0 = inlined_call_operand.vmem [shape: s32[1,128], index: 0, kind: input, shape index: {}]   ;;  %s528_s2 = inlined_call_operand.vmem [shape: f32[32,16], index: 2, kind: input, shape index: {}]   ;;  %s529_s1 = inlined_call_operand.vmem [shape: f32[1,128], index: 1, kind: input, shape index: {}]   ;;  %s530_s5 = inlined_call_operand.vmem [shape: f32[128,40], index: 5, kind: output, shape index: {}]  }
   0x1   :  { %363 = vset.pattern.permute.xlu0 %v368_v1  ;;  %v137_v2 = vld [vmem:[%s525_s3] sm:$0xff]  ;;  %v37_v5 = vld [vmem:[%s528_s2 + $0x10] sm:$0xff]  ;;  %v36_v10 = vld [vmem:[%s528_s2 + $0x8] sm:$0xff]  ;;  %v370_v27 = vmov 683565275  }
   0x2   :  { %146 = vperm.xlu0 %363, %v137_v2   ;;  %v409_v3 = vshrl.u32 %v22_v0, 7  ;;  %v35_v4 = vld [vmem:[%s528_s2] sm:$0xff]  ;;  %343 = vmatprep.mubr.msk.f32.mxu1 %vm39_vm0, %v37_v5  ;;  %v38_v11 = vld [vmem:[%s528_s2 + $0x18] sm:$0xff]  ;;  %v371_v29 = vmov 2475754826  }
   0x3   :  { %v150_v6 = vld [vmem:[%s526_s4] sm:$0xff]  ;;  %340 = vmatprep.mubr.msk.f32.mxu0 %vm39_vm0, %v35_v4  ;;  %v372_v32 = vmov 2131351028   ;;  %v373_v35 = vmov 2102212464  }
   0x4   :  { %v316_v7 = vld [vmem:[%s527_s0] ss:$0 sm:$0xff]  ;;  %v24_v8 = vadd.s32 8, %v409_v3  ;;  %v374_v38 = vmov 920167782   ;;  %vm157_vm14 = vcmp.eq.s32.totalorder %v409_v3, 0 }
   0x5   :  { %vm29_vm2 = vcmp.eq.s32.totalorder %v409_v3, %v316_v7  ;;  %v325_v13 = vld [vmem:[%s529_s1] ss:$0 sm:$0xff]  ;;  %v375_v41 = vmov 1326507024  }
   0x6   :  { %153 = vperm.xlu0 %363, %v150_v6   ;;  %vm30_vm1 = vcmp.eq.s32.totalorder %v24_v8, %v316_v7 }
   0x7   :  { %336 = vmatprep.subr.msk.mxu0 %vm30_vm1, %v369_v9  ;;  %346 = vmatprep.subr.msk.mxu1 %vm30_vm1, %v369_v9 }
   0x8   :  { %337 = vmatpush3.msk.msra.mxu0 %vm30_vm1, %v369_v9  ;;  %348 = vmatpush3.msk.msra.mxu1 %vm30_vm1, %v369_v9  ;;  %vm295_vm1 = vcmask 326656  }
   0x9   :  { %338 = vmatprep.subr.msk.mxu0 %vm29_vm2, %v369_v9  ;;  %347 = vmatprep.subr.msk.mxu1 %vm29_vm2, %v369_v9 }
   0xa   :  { %339 = vmatpush3.msk.msra.mxu0 %vm29_vm2, %v369_v9  ;;  %349 = vmatpush3.msk.msra.mxu1 %vm29_vm2, %v369_v9 }
   0xb   :  { %341 = vmatmul.mubr.msk.f32.vlgmr.msra.gmra.mxu0 %vm39_vm0, %v36_v10  ;;  %344 = vmatmul.mubr.msk.f32.vlgmr.msra.gmra.mxu1 %vm39_vm0, %v38_v11 }
  0x7d   :  { %v147_v12 = vpop.permute.xlu0 %146 }
  0x7e   :  { %v149_v14 = vmul.f32 %v325_v13, %v147_v12 }
  0x81   :  { %v154_v15 = vpop.permute.xlu0 %153 }
  0x82   :  { %v438_v16 = vadd.f32 %v154_v15, %v149_v14 }
  0x84   :  { %v161_v17 = vand.u32 2139095040, %v438_v16  ;;  %v158_v21 = vand.u32 2147483647, %v438_v16  ;;  %vm160_vm10 = vcmp.lt.s32.totalorder %v438_v16, 0  ;;  %vm250_vm0 = vweird.f32 %v438_v16 }
  0x86   :  { %v162_v18 = vshrl.u32 %v161_v17, 23  ;;  %v165_v25 = vand.u32 8388607, %v158_v21  ;;  %vm159_vm11 = vcmp.le.f32.partialorder %v158_v21, 0.7853982 }
  0x88   :  { %v326_v19 = vadd.s32 4294967169, %v162_v18  ;;  %v166_v43 = vor.u32 8388608, %v165_v25 }
  0x8a   :  { %v168_v20 = vadd.s32 1, %v326_v19  ;;  %v206_v57 = vshll.u32 %v166_v43, 8 }
  0x8c   :  { %vm169_vm3 = vcmp.gt.s32.totalorder %v168_v20, 0 }
  0x8d   :  { %v170_v22 = vsel %vm169_vm3, %v168_v20, 0 }
  0x8e   :  { %v172_v23 = vand.u32 31, %v170_v22  ;;  %v171_v26 = vshrl.u32 %v170_v22, 5 }
  0x90   :  { %v173_v24 = vsub.s32 32, %v172_v23  ;;  %v175_v28 = vshll.u32 %v370_v27, %v172_v23  ;;  %v178_v30 = vshll.u32 %v371_v29, %v172_v23  ;;  %v181_v34 = vshll.u32 %v372_v32, %v172_v23 }
  0x91   :  { %v184_v37 = vshll.u32 %v373_v35, %v172_v23  ;;  %v187_v40 = vshll.u32 %v374_v38, %v172_v23  ;;  %vm190_vm4 = vcmp.lt.s32.totalorder %v171_v26, 1  ;;  %vm193_vm5 = vcmp.lt.s32.totalorder %v171_v26, 4 }
  0x92   :  { %v176_v31 = vshrl.u32 %v371_v29, %v173_v24  ;;  %v179_v33 = vshrl.u32 %v372_v32, %v173_v24  ;;  %v182_v36 = vshrl.u32 %v373_v35, %v173_v24  ;;  %v185_v39 = vshrl.u32 %v374_v38, %v173_v24 }
  0x93   :  { %v188_v42 = vshrl.u32 %v375_v41, %v173_v24  ;;  %v174_v52 = vshrl.u32 %v370_v27, %v173_v24  ;;  %vm192_vm6 = vcmp.lt.s32.totalorder %v171_v26, 3  ;;  %vm191_vm7 = vcmp.lt.s32.totalorder %v171_v26, 2 }
  0x94   :  { %v177_v44 = vor.u32 %v176_v31, %v175_v28  ;;  %v180_v45 = vor.u32 %v179_v33, %v178_v30  ;;  %v183_v46 = vor.u32 %v182_v36, %v181_v34  ;;  %v186_v47 = vor.u32 %v185_v39, %v184_v37 }
  0x95   :  { %v189_v48 = vor.u32 %v188_v42, %v187_v40 }
  0x96   :  { %v195_v49 = vsel %vm193_vm5, %v183_v46, 2102212464  ;;  %v198_v50 = vsel %vm190_vm4, %v177_v44, %v180_v45  ;;  %v202_v51 = vsel %vm190_vm4, %v180_v45, %v183_v46  ;;  %v199_v53 = vsel %vm193_vm5, %v186_v47, 920167782 }
  0x97   :  { %v203_v54 = vsel %vm193_vm5, %v189_v48, 1326507024  ;;  %v200_v55 = vsel %vm192_vm6, %v183_v46, %v199_v53  ;;  %v194_v58 = vsel %vm190_vm4, %v174_v52, %v177_v44  ;;  %v196_v59 = vsel %vm192_vm6, %v180_v45, %v195_v49 }
  0x98   :  { %v204_v56 = vsel %vm192_vm6, %v186_v47, %v203_v54  ;;  %v201_v60 = vsel %vm191_vm7, %v198_v50, %v200_v55  ;;  %v197_v2 = vsel %vm191_vm7, %v194_v58, %v196_v59 }
  0x99   :  { %v205_v61 = vsel %vm191_vm7, %v202_v51, %v204_v56  ;;  %v447_v0 = vmul.u32.u64.low %v206_v57, %v201_v60  ;;  %v448_v1 = vmul.u32.u64.high %v206_v57, %v201_v60, %v447_v0  ;;  %v213_v5 = vmul.u32 %v206_v57, %v197_v2 }
  0x9a   :  { %v444_v62 = vmul.u32.u64.low %v206_v57, %v205_v61  ;;  %v445_v63 = vmul.u32.u64.high %v206_v57, %v205_v61, %v444_v62 }
  0x9b   :  { %v216_v4 = vadd.s32 1, %v448_v1 }
  0x9c   :  { %vm215_vm8 = vc.u32 %v445_v63, %v447_v0  ;;  %v214_v18 = vadd.s32 %v447_v0, %v445_v63 }
  0x9d   :  { %v217_v6 = vsel %vm215_vm8, %v216_v4, %v448_v1 }
  0x9e   :  { %v218_v7 = vadd.s32 %v217_v6, %v213_v5 }
  0xa0   :  { %v219_v8 = vadd.s32 536870912, %v218_v7 }
  0xa2   :  { %v220_v9 = vshrl.u32 %v219_v8, 30 }
  0xa4   :  { %v221_v10 = vshll.u32 %v220_v9, 30  ;;  %v244_v32 = vsub.s32 4, %v220_v9 }
  0xa6   :  { %v222_v11 = vsub.s32 %v218_v7, %v221_v10  ;;  %v245_v35 = vsel %vm160_vm10, %v244_v32, %v220_v9 }
  0xa7   :  { %v247_v36 = vsel %vm159_vm11, 0, %v245_v35 }
  0xa8   :  { %v224_v12 = vsub.s32 0, %v222_v11  ;;  %v251_v37 = vadd.s32 3, %v247_v36 }
  0xaa   :  { %v327_v13 = vmin.u32 %v224_v12, %v222_v11  ;;  %v252_v38 = vand.u32 3, %v251_v37 }
  0xac   :  { %v226_v14 = vclz %v327_v13  ;;  %vm257_vm12 = vcmp.eq.s32.totalorder %v252_v38, 2  ;;  %vm254_vm13 = vcmp.eq.s32.totalorder %v252_v38, 0  ;;  %vm253_vm15 = vcmp.lt.s32.totalorder %v252_v38, 2 }
  0xae   :  { %v328_v15 = vadd.s32 4294967294, %v226_v14 }
  0xb0   :  { %vm329_vm9 = vcmp.lt.s32.totalorder %v328_v15, 0 }
  0xb1   :  { %v229_v17 = vsel %vm329_vm9, 0, %v328_v15 }
  0xb2   :  { %v230_v19 = vsub.s32 32, %v229_v17  ;;  %v234_v20 = vsub.s32 4294967266, %v229_v17  ;;  %v231_v22 = vshll.u32 %v222_v11, %v229_v17 }
  0xb4   :  { %v232_v23 = vshrl.u32 %v214_v18, %v230_v19  ;;  %v235_v24 = vadd.s32 127, %v234_v20 }
  0xb6   :  { %v233_v25 = vor.u32 %v232_v23, %v231_v22  ;;  %v236_v26 = vshll.u32 %v235_v24, 23 }
  0xb8   :  { %v237_v27 = vor.u32 4788187, %v236_v26  ;;  %v240_v29 = vcvt.s32.f32 %v233_v25 }
  0xba   :  { %v238_v28 = vand.u32 2147483647, %v237_v27 }
  0xbc   :  { %v241_v30 = vmul.f32 %v240_v29, %v238_v28 }
  0xbe   :  { %v242_v31 = vxor.u32 2147483648, %v241_v30 }
  0xc0   :  { %v243_v33 = vsel %vm160_vm10, %v242_v31, %v241_v30 }
  0xc1   :  { %v246_v34 = vsel %vm159_vm11, %v438_v16, %v243_v33 }
  0xc2   :  { %364 = vcosq.f32 %v246_v34 }
  0xc3   :  { %366 = vsinq.f32 %v246_v34 }
  0xcb   :  { %v342_v46 = vpop.f32.mrf.mxu0  ;;  %v345_v49 = vpop.f32.mrf.mxu1 }
  0xcd   :  { %v118_v48 = vpop.f32.mrf.mxu0  ;;  %v128_v50 = vpop.f32.mrf.mxu1 }
  0xcf   :  { %v365_v39 = vpop.eup %364 }
  0xd0   :  { %v367_v40 = vpop.eup %366  ;;  %v258_v41 = vxor.u32 2147483648, %v365_v39 }
  0xd1   :  { %v255_v42 = vxor.u32 2147483648, %v367_v40 }
  0xd2   :  { %v259_v43 = vsel %vm257_vm12, %v258_v41, %v367_v40 }
  0xd3   :  { %v256_v21 = vsel %vm254_vm13, %v365_v39, %v255_v42 }
  0xd4   :  { %v260_v44 = vsel %vm253_vm15, %v256_v21, %v259_v43 }
  0xd5   :  { %v261_v45 = vsel %vm250_vm0, nan, %v260_v44 }
  0xd6   :  { %v262_v47 = vsel %vm157_vm14, %v438_v16, %v261_v45 }
  0xd7   :  { %263 = vxpose.xlu1.b32.start [1/5] (short) %v262_v47, 128 }
  0xdb   :  { %264 = vxpose.xlu1.b32.cont [2/5] (short) %v118_v48, 128 }
  0xdf   :  { %265 = vxpose.xlu1.b32.cont [3/5] (short) %v342_v46, 128 }
  0xe3   :  { %266 = vxpose.xlu1.b32.cont [4/5] (short) %v128_v50, 128 }
  0xe7   :  { %267 = vxpose.xlu1.b32.end [5/5] (short) %v345_v49, 128 }
 0x153   :  { %v279_v51 = vpop.trf.xlu1 }
 0x154   :  { %296 = vst.msk [vmem:[%s530_s5] sm:$0xff] %vm295_vm1, %v279_v51 }
 0x157   :  { %v280_v3 = vpop.trf.xlu1 }
 0x158   :  { %297 = vst.msk [vmem:[%s530_s5 + $0x8] sm:$0xff] %vm295_vm1, %v280_v3 }
 0x15b   :  { %v281_v16 = vpop.trf.xlu1 }
 0x15c   :  { %298 = vst.msk [vmem:[%s530_s5 + $0x10] sm:$0xff] %vm295_vm1, %v281_v16 }
 0x15f   :  { %v282_v52 = vpop.trf.xlu1 }
 0x160   :  { %299 = vst.msk [vmem:[%s530_s5 + $0x18] sm:$0xff] %vm295_vm1, %v282_v52 }
 0x163   :  { %v283_v53 = vpop.trf.xlu1 }
 0x164   :  { %300 = vst.msk [vmem:[%s530_s5 + $0x20] sm:$0xff] %vm295_vm1, %v283_v53 }
 0x167   :  { %v284_v54 = vpop.trf.xlu1 }
 0x168   :  { %301 = vst.msk [vmem:[%s530_s5 + $0x28] sm:$0xff] %vm295_vm1, %v284_v54 }
 0x16b   :  { %v285_v55 = vpop.trf.xlu1 }
 0x16c   :  { %302 = vst.msk [vmem:[%s530_s5 + $0x30] sm:$0xff] %vm295_vm1, %v285_v55 }
 0x16f   :  { %v286_v56 = vpop.trf.xlu1 }
 0x170   :  { %303 = vst.msk [vmem:[%s530_s5 + $0x38] sm:$0xff] %vm295_vm1, %v286_v56 }
 0x173   :  { %v287_v57 = vpop.trf.xlu1 }
 0x174   :  { %304 = vst.msk [vmem:[%s530_s5 + $0x40] sm:$0xff] %vm295_vm1, %v287_v57 }
 0x177   :  { %v288_v58 = vpop.trf.xlu1 }
 0x178   :  { %305 = vst.msk [vmem:[%s530_s5 + $0x48] sm:$0xff] %vm295_vm1, %v288_v58 }
 0x17b   :  { %v289_v59 = vpop.trf.xlu1 }
 0x17c   :  { %306 = vst.msk [vmem:[%s530_s5 + $0x50] sm:$0xff] %vm295_vm1, %v289_v59 }
 0x17f   :  { %v290_v60 = vpop.trf.xlu1 }
 0x180   :  { %307 = vst.msk [vmem:[%s530_s5 + $0x58] sm:$0xff] %vm295_vm1, %v290_v60 }
 0x183   :  { %v291_v61 = vpop.trf.xlu1 }
 0x184   :  { %308 = vst.msk [vmem:[%s530_s5 + $0x60] sm:$0xff] %vm295_vm1, %v291_v61 }
 0x187   :  { %v292_v62 = vpop.trf.xlu1 }
 0x188   :  { %309 = vst.msk [vmem:[%s530_s5 + $0x68] sm:$0xff] %vm295_vm1, %v292_v62 }
 0x18b   :  { %v293_v63 = vpop.trf.xlu1 }
 0x18c   :  { %310 = vst.msk [vmem:[%s530_s5 + $0x70] sm:$0xff] %vm295_vm1, %v293_v63 }
 0x18f   :  { %v294_v0 = vpop.trf.xlu1 }
 0x190   :  { %311 = vst.msk [vmem:[%s530_s5 + $0x78] sm:$0xff] %vm295_vm1, %v294_v0 }

</bundles_post_ra>
